<compile_context>
chip_gen: v5e
topology: v5e:2x2
jax: 0.10.0
libtpu: 0.0.40
codegen_flags: <defaults>
</compile_context>

<pallas_src>
import jax
import jax.numpy as jnp
from jax.experimental import pallas as pl
from jax.experimental.pallas import tpu as pltpu


# --------------------------------------------------------------------------- #
# Kernel
# --------------------------------------------------------------------------- #
def _drop_path_kernel(scaled_mask_ref, x_hbm, o_ref, buf, sem):
    """One grid step = one (TR, L) row-block of one batch sample.

    x_hbm: full (B, R, L) input left in HBM.  buf: (2, TR, L) VMEM double
    buffer.  sem: (2,) DMA semaphores.  o_ref: (TR, L) auto-pipelined output
    block (leading batch dim squeezed).
    """
    b = pl.program_id(0)
    s = pl.program_id(1)
    nblk = pl.num_programs(1)

    TR = o_ref.shape[0]                       # static rows per block
    scale = scaled_mask_ref[b]                # f32 scalar: 0.0 or 1/keep_prob
    kept = scale != 0.0

    def dma(slot, blk):
        return pltpu.make_async_copy(
            x_hbm.at[b, pl.ds(blk * TR, TR)],  # (TR, L) slice of sample b
            buf.at[slot],
            sem.at[slot],
        )

    @pl.when(kept)
    def _():
        # Prime the double buffer at the first row-block of this sample.
        @pl.when(s == 0)
        def _():
            dma(0, 0).start()

        # Prefetch the next row-block of the *same* sample; the row-block axis
        # is "arbitrary" so it executes next on this core (DMAs balance within
        # the sample, safe under megacore sharding of the batch axis).
        @pl.when(s + 1 < nblk)
        def _():
            dma((s + 1) & 1, s + 1).start()

        slot = s & 1
        dma(slot, s).wait()
        # Multiply in the input dtype (scale cast once) - minimal VALU work for
        # bf16/fp8; numerically within 1-2 ulp of torch's div-then-mask.
        o_ref[...] = buf[slot] * scale.astype(o_ref.dtype)

    @pl.when(jnp.logical_not(kept))
    def _():
        # Dropped sample: no input DMA at all, just write zeros.
        o_ref[...] = jnp.zeros_like(o_ref)


# --------------------------------------------------------------------------- #
# Tiling helpers
# --------------------------------------------------------------------------- #
def _lane_dense_shape(shape):
    """Flatten each sample to (R, L) with L a multiple of 128 when possible."""
    B = int(shape[0])
    if len(shape) == 1:
        return B, 1, 1
    N = 1
    for d in shape[1:]:
        N *= int(d)
    if N % 128 == 0:
        L = 128
        for cand in (1024, 512, 256, 128):
            if N % cand == 0:
                L = cand
                break
    else:
        # TODO(synk): pad the flattened sample to a multiple of 128 (and slice
        # after) instead of accepting masked partial stores for odd widths.
        L = int(shape[-1])
    return B, N // L, L


def _pick_rows(R, max_rows):
    """Largest TR <= max_rows with R % TR == 0, preferring multiples of 8."""
    if R <= max_rows:
        return R
    r = (max_rows // 8) * 8
    while r >= 8:
        if R % r == 0:
            return r
        r -= 8
    # Last resort for pathological (prime-ish) R.
    # TODO(synk): handle with a pl.when-guarded ragged remainder block instead.
    for r in range(min(max_rows, R), 0, -1):
        if R % r == 0:
            return r
    return 1


def _hw_tuning():
    """(target_tile_bytes, vmem_limit_bytes), generation-aware when queryable."""
    target = 4 * 1024 * 1024
    limit = 48 * 1024 * 1024
    try:
        cap = getattr(pltpu.get_tpu_info(), "vmem_capacity_bytes", None)
        if cap is not None:
            if cap <= 80 * 1024 * 1024:
                # v7x-class (64 MiB VMEM, ~3.2 TB/s): bigger tiles amortize the
                # ~0.35us/step overhead; 2x(in)+2x(out) tiles stay under 48 MiB.
                target = 8 * 1024 * 1024
                limit = 48 * 1024 * 1024
            else:
                # v5e/v6e-class (128 MiB VMEM): 4 MiB tiles already hit roofline.
                target = 4 * 1024 * 1024
                limit = 64 * 1024 * 1024
    except Exception:
        pass
    return target, limit


# --------------------------------------------------------------------------- #
# Public wrapper
# --------------------------------------------------------------------------- #
def drop_path(hidden_state, drop_prob, key, *, training=True, in_place=False):
    """DropPath forward for hidden_state of shape (B, ...). Drop decision is
    per index along axis 0 and broadcast over all other axes."""
    if drop_prob == 0.0 or not training:
        return hidden_state

    keep_prob = 1.0 - drop_prob
    shape = hidden_state.shape

    # Per-sample binary mask, same construction as torch: floor(keep_prob + U[0,1)).
    B = shape[0]
    rand = jax.random.uniform(key, (B,), dtype=jnp.float32)
    mask = jnp.floor(keep_prob + rand)                 # (B,) of 0.0 / 1.0
    scaled_mask = mask * jnp.float32(1.0 / keep_prob)  # fold 1/keep_prob once

    # Lane-dense per-sample view (free reshape of a contiguous array).
    B_, R, L = _lane_dense_shape(shape)
    x = hidden_state.reshape(B_, R, L)

    target_bytes, vmem_limit = _hw_tuning()
    itemsize = jnp.dtype(hidden_state.dtype).itemsize
    rows_by_bytes = max(1, target_bytes // (L * itemsize))
    # Grid-step floor: aim for >= ~8 total steps so both v7x TensorCores get
    # work and first/last DMAs are hidden (no effect on large shapes, never
    # forces sub-8-row blocks).
    blocks_wanted = max(1, -(-8 // B_))
    rows_by_grid = R if R < 8 * blocks_wanted else max(8, R // blocks_wanted)
    TR = _pick_rows(R, max(1, min(rows_by_bytes, rows_by_grid)))
    nblk = R // TR
    grid = (B_, nblk)

    out3 = pl.pallas_call(
        _drop_path_kernel,
        out_shape=jax.ShapeDtypeStruct((B_, R, L), hidden_state.dtype),
        grid_spec=pltpu.PrefetchScalarGridSpec(
            num_scalar_prefetch=1,                      # scaled_mask -> SMEM
            grid=grid,
            in_specs=[
                pl.BlockSpec(memory_space=pl.ANY),      # input stays in HBM
            ],
            out_specs=pl.BlockSpec(
                (pl.Squeezed(), TR, L), lambda b, s, m: (b, s, 0)),
            scratch_shapes=[
                pltpu.VMEM((2, TR, L), hidden_state.dtype),  # input double buffer
                pltpu.SemaphoreType.DMA((2,)),
            ],
        ),
        # Optional in-place HBM update (input index 1: index 0 is the
        # scalar-prefetch operand). Only enable when the caller donates x.
        input_output_aliases=({1: 0} if in_place else {}),
        compiler_params=pltpu.CompilerParams(
            dimension_semantics=("parallel", "arbitrary"),
            vmem_limit_bytes=vmem_limit,
        ),
    )(scaled_mask, x)

    return out3.reshape(shape)


# --------------------------------------------------------------------------- #
# Demo / correctness check
# --------------------------------------------------------------------------- #
def _reference(x, drop_prob, key):
    keep_prob = 1.0 - drop_prob
    B = x.shape[0]
    rand = jax.random.uniform(key, (B,), dtype=jnp.float32)
    mask = jnp.floor(keep_prob + rand).reshape((B,) + (1,) * (x.ndim - 1))
    return x / keep_prob * mask.astype(x.dtype)


if __name__ == "__main__":
    root = jax.random.PRNGKey(0)
    k_x, k_x4, k_xo, k_m1, k_m2, k_m3 = jax.random.split(root, 6)

    # Case 1: [B, S, H] = [2, 8, 32]  (per-sample flatten -> lane-dense L=256)
    x = jax.random.normal(k_x, (2, 8, 32), dtype=jnp.float32)
    out = jax.block_until_ready(drop_path(x, 0.3, k_m1, training=True))
    assert jnp.allclose(out, _reference(x, 0.3, k_m1), atol=1e-6, rtol=1e-6)

    # Case 2: conv-style [B, C, H, W] = [2, 4, 16, 16]  (flatten -> L=1024)
    x4 = jax.random.normal(k_x4, (2, 4, 16, 16), dtype=jnp.float32)
    out4 = jax.block_until_ready(drop_path(x4, 0.5, k_m2, training=True))
    assert jnp.allclose(out4, _reference(x4, 0.5, k_m2), atol=1e-6, rtol=1e-6)

    # Case 3: odd width [2, 6, 20]  (non-128-divisible fallback path)
    xo = jax.random.normal(k_xo, (2, 6, 20), dtype=jnp.float32)
    outo = jax.block_until_ready(drop_path(xo, 0.25, k_m3, training=True))
    assert jnp.allclose(outo, _reference(xo, 0.25, k_m3), atol=1e-6, rtol=1e-6)

    # Eval mode / drop_prob == 0.0 are identity passthrough (as in the module).
    assert jnp.array_equal(
        jax.block_until_ready(drop_path(x, 0.3, k_m1, training=False)), x)
    assert jnp.array_equal(
        jax.block_until_ready(drop_path(x, 0.0, k_m1, training=True)), x)

    print("KERNEL_OK")
</pallas_src>

<mosaic_0001>
module attributes {stable_mosaic.version = 11 : i64} {
  func.func @_drop_path_kernel(%arg0: i32, %arg1: i32, %arg2: memref<2xf32, #tpu.memory_space<smem>>, %arg3: memref<2x1x256xf32, #tpu.memory_space<any>>, %arg4: memref<1x1x256xf32, #tpu.memory_space<vmem>>, %arg5: memref<2x1x256xf32, #tpu.memory_space<vmem>>, %arg6: memref<2x!tpu.dma_semaphore, #tpu.memory_space<semaphore_mem>>) attributes {dimension_semantics = [#tpu.dimension_semantics<parallel>, #tpu.dimension_semantics<arbitrary>], iteration_bounds = array<i64: 2, 1>, scalar_prefetch = 1 : i64, scratch_operands = 2 : i64, tpu.core_type = #tpu.core_type<tc>, window_params = [{}, {transform_indices = @transform_1, window_bounds = array<i64: 1, 1, 256>}]} {
    %0 = arith.index_cast %arg0 : i32 to index
    %1 = memref.load %arg2[%0] : memref<2xf32, #tpu.memory_space<smem>>
    %cst = arith.constant 0.000000e+00 : f32
    %2 = arith.cmpf one, %1, %cst : f32
    %3 = arith.extui %2 : i1 to i32
    %c0_i32 = arith.constant 0 : i32
    %4 = arith.cmpi ne, %3, %c0_i32 : i32
    scf.if %4 {
      %c0_i32_1 = arith.constant 0 : i32
      %8 = arith.cmpi eq, %arg1, %c0_i32_1 : i32
      %9 = arith.extui %8 : i1 to i32
      %c0_i32_2 = arith.constant 0 : i32
      %10 = arith.cmpi ne, %9, %c0_i32_2 : i32
      scf.if %10 {
        %c0_i32_14 = arith.constant 0 : i32
        %c0_i32_15 = arith.constant 0 : i32
        %c0_i32_16 = arith.constant 0 : i32
        %c0_i32_17 = arith.constant 0 : i32
        %31 = tpu.memref_slice %arg3[%arg0, %c0_i32_16, %c0_i32_17] : memref<2x1x256xf32, #tpu.memory_space<any>> -> memref<1x1x256xf32, #tpu.memory_space<any>>
        %32 = tpu.memref_squeeze %31 : memref<1x1x256xf32, #tpu.memory_space<any>> -> memref<1x256xf32, #tpu.memory_space<any>>
        %c0_i32_18 = arith.constant 0 : i32
        %c0_i32_19 = arith.constant 0 : i32
        %33 = tpu.memref_slice %arg5[%c0_i32_14, %c0_i32_18, %c0_i32_19] : memref<2x1x256xf32, #tpu.memory_space<vmem>> -> memref<1x1x256xf32, #tpu.memory_space<vmem>>
        %34 = tpu.memref_squeeze %33 : memref<1x1x256xf32, #tpu.memory_space<vmem>> -> memref<1x256xf32, #tpu.memory_space<vmem>>
        %35 = tpu.memref_slice %arg6[%c0_i32_15] : memref<2x!tpu.dma_semaphore, #tpu.memory_space<semaphore_mem>> -> memref<1x!tpu.dma_semaphore, #tpu.memory_space<semaphore_mem>>
        %36 = tpu.memref_squeeze %35 : memref<1x!tpu.dma_semaphore, #tpu.memory_space<semaphore_mem>> -> memref<!tpu.dma_semaphore, #tpu.memory_space<semaphore_mem>>
        tpu.enqueue_dma source(%32 : memref<1x256xf32, #tpu.memory_space<any>>) target(%34 : memref<1x256xf32, #tpu.memory_space<vmem>>) target_semaphore(%36 : memref<!tpu.dma_semaphore, #tpu.memory_space<semaphore_mem>>)
      } else {
      }
      %c1_i32 = arith.constant 1 : i32
      %11 = arith.addi %arg1, %c1_i32 : i32
      %c1_i32_3 = arith.constant 1 : i32
      %12 = arith.cmpi slt, %11, %c1_i32_3 : i32
      %13 = arith.extui %12 : i1 to i32
      %c0_i32_4 = arith.constant 0 : i32
      %14 = arith.cmpi ne, %13, %c0_i32_4 : i32
      scf.if %14 {
        %c1_i32_14 = arith.constant 1 : i32
        %31 = arith.addi %arg1, %c1_i32_14 : i32
        %c1_i32_15 = arith.constant 1 : i32
        %32 = arith.andi %31, %c1_i32_15 : i32
        %c1_i32_16 = arith.constant 1 : i32
        %33 = arith.addi %arg1, %c1_i32_16 : i32
        %c1_i32_17 = arith.constant 1 : i32
        %34 = arith.muli %33, %c1_i32_17 : i32
        %c0_i32_18 = arith.constant 0 : i32
        %35 = tpu.memref_slice %arg3[%arg0, %34, %c0_i32_18] : memref<2x1x256xf32, #tpu.memory_space<any>> -> memref<1x1x256xf32, #tpu.memory_space<any>>
        %36 = tpu.memref_squeeze %35 : memref<1x1x256xf32, #tpu.memory_space<any>> -> memref<1x256xf32, #tpu.memory_space<any>>
        %c0_i32_19 = arith.constant 0 : i32
        %c0_i32_20 = arith.constant 0 : i32
        %37 = tpu.memref_slice %arg5[%32, %c0_i32_19, %c0_i32_20] : memref<2x1x256xf32, #tpu.memory_space<vmem>> -> memref<1x1x256xf32, #tpu.memory_space<vmem>>
        %38 = tpu.memref_squeeze %37 : memref<1x1x256xf32, #tpu.memory_space<vmem>> -> memref<1x256xf32, #tpu.memory_space<vmem>>
        %39 = tpu.memref_slice %arg6[%32] : memref<2x!tpu.dma_semaphore, #tpu.memory_space<semaphore_mem>> -> memref<1x!tpu.dma_semaphore, #tpu.memory_space<semaphore_mem>>
        %40 = tpu.memref_squeeze %39 : memref<1x!tpu.dma_semaphore, #tpu.memory_space<semaphore_mem>> -> memref<!tpu.dma_semaphore, #tpu.memory_space<semaphore_mem>>
        tpu.enqueue_dma source(%36 : memref<1x256xf32, #tpu.memory_space<any>>) target(%38 : memref<1x256xf32, #tpu.memory_space<vmem>>) target_semaphore(%40 : memref<!tpu.dma_semaphore, #tpu.memory_space<semaphore_mem>>)
      } else {
      }
      %c1_i32_5 = arith.constant 1 : i32
      %15 = arith.andi %arg1, %c1_i32_5 : i32
      %c1_i32_6 = arith.constant 1 : i32
      %16 = arith.muli %arg1, %c1_i32_6 : i32
      %c0_i32_7 = arith.constant 0 : i32
      %17 = tpu.memref_slice %arg3[%arg0, %16, %c0_i32_7] : memref<2x1x256xf32, #tpu.memory_space<any>> -> memref<1x1x256xf32, #tpu.memory_space<any>>
      %18 = tpu.memref_squeeze %17 : memref<1x1x256xf32, #tpu.memory_space<any>> -> memref<1x256xf32, #tpu.memory_space<any>>
      %c0_i32_8 = arith.constant 0 : i32
      %c0_i32_9 = arith.constant 0 : i32
      %19 = tpu.memref_slice %arg5[%15, %c0_i32_8, %c0_i32_9] : memref<2x1x256xf32, #tpu.memory_space<vmem>> -> memref<1x1x256xf32, #tpu.memory_space<vmem>>
      %20 = tpu.memref_squeeze %19 : memref<1x1x256xf32, #tpu.memory_space<vmem>> -> memref<1x256xf32, #tpu.memory_space<vmem>>
      %21 = tpu.memref_slice %arg6[%15] : memref<2x!tpu.dma_semaphore, #tpu.memory_space<semaphore_mem>> -> memref<1x!tpu.dma_semaphore, #tpu.memory_space<semaphore_mem>>
      %22 = tpu.memref_squeeze %21 : memref<1x!tpu.dma_semaphore, #tpu.memory_space<semaphore_mem>> -> memref<!tpu.dma_semaphore, #tpu.memory_space<semaphore_mem>>
      tpu.wait_dma2 semaphore(%22 : memref<!tpu.dma_semaphore, #tpu.memory_space<semaphore_mem>>) src(%18 : memref<1x256xf32, #tpu.memory_space<any>>) dst(%20 : memref<1x256xf32, #tpu.memory_space<vmem>>)
      %23 = arith.index_cast %15 : i32 to index
      %c0 = arith.constant 0 : index
      %c0_10 = arith.constant 0 : index
      %24 = vector.load %arg5[%23, %c0, %c0_10] : memref<2x1x256xf32, #tpu.memory_space<vmem>>, vector<1x1x256xf32>
      %25 = vector.shape_cast %24 : vector<1x1x256xf32> to vector<1x256xf32>
      %26 = vector.broadcast %1 : f32 to vector<1x256xf32>
      %27 = arith.mulf %25, %26 : vector<1x256xf32>
      %c0_11 = arith.constant 0 : index
      %c0_12 = arith.constant 0 : index
      %c0_13 = arith.constant 0 : index
      %28 = vector.load %arg4[%c0_11, %c0_12, %c0_13] : memref<1x1x256xf32, #tpu.memory_space<vmem>>, vector<1x1x256xf32>
      %29 = vector.shape_cast %28 : vector<1x1x256xf32> to vector<1x256xf32>
      %30 = vector.shape_cast %27 : vector<1x256xf32> to vector<1x1x256xf32>
      tpu.vector_store %arg4[%c0_11, %c0_12, %c0_13], %30 {strides = array<i32>} : memref<1x1x256xf32, #tpu.memory_space<vmem>>, vector<1x1x256xf32>,
    } else {
    }
    %true = arith.constant true
    %5 = arith.xori %2, %true : i1
    %6 = arith.extui %5 : i1 to i32
    %c0_i32_0 = arith.constant 0 : i32
    %7 = arith.cmpi ne, %6, %c0_i32_0 : i32
    scf.if %7 {
      %cst_1 = arith.constant 0.000000e+00 : f32
      %8 = vector.broadcast %cst_1 : f32 to vector<1x256xf32>
      %c0 = arith.constant 0 : index
      %c0_2 = arith.constant 0 : index
      %c0_3 = arith.constant 0 : index
      %9 = vector.load %arg4[%c0, %c0_2, %c0_3] : memref<1x1x256xf32, #tpu.memory_space<vmem>>, vector<1x1x256xf32>
      %10 = vector.shape_cast %9 : vector<1x1x256xf32> to vector<1x256xf32>
      %11 = vector.shape_cast %8 : vector<1x256xf32> to vector<1x1x256xf32>
      tpu.vector_store %arg4[%c0, %c0_2, %c0_3], %11 {strides = array<i32>} : memref<1x1x256xf32, #tpu.memory_space<vmem>>, vector<1x1x256xf32>,
    } else {
    }
    return
  }
  func.func @transform_1(%arg0: i32, %arg1: i32, %arg2: memref<2xf32, #tpu.memory_space<smem>>) -> (i32, i32, i32) {
    %c0_i32 = arith.constant 0 : i32
    %c0_i32_0 = arith.constant 0 : i32
    return %arg0, %arg1, %c0_i32 : i32, i32, i32
  }
}

</mosaic_0001>

<bundles_post_ra>
// kernel: tpu_custom_call.1
= control target key start
LH: loop header
LB: loop body
LE: loop exit
PB: predicated region body
PF: predicated region fallthrough
CT: control target
= control target key end

     0   :  { %s391_s12 = smov [#allocation5]   ;;  %s488_s0 = inlined_call_operand.hbm [shape: f32[2], index: 0, kind: input, shape index: {}]   ;;  %s489_s1 = inlined_call_operand.hbm [shape: f32[2,1,256], index: 1, kind: input, shape index: {}]   ;;  %s490_s2 = inlined_call_operand.hbm [shape: f32[2,1,256], index: 2, kind: output, shape index: {}]  }
   0x1   :  { %s8_s11 = sshll.u32 %s488_s0, 4  ;;  %s9_s11 = int_to_ptr.hbm [resolvable:$true] %s8_s11 }
   0x2   :  { %11 = dma.hbm_to_smem %s9_s11, 16, %s391_s12, [#allocation4] }
   0x3   :  { %367 = dma.done.wait [#allocation4], 16 }
   0x4   :  { %368 = vsyncadd [#allocation4], 4294967280 }
   0x5   :  { %14 = sfence }
   0x6   :  { %15 = vsyncpa [#allocation7], 0 }
   0x7   :  { %17 = vsyncpa [#allocation7 + $0x1], 0  ;;  %s412_s13 = smov 0   ;;  %s414_s14 = smov 0  }
   0x8   :  { %s416_s15 = smov 0   ;;  %s418_s16 = smov 0  }
   0x9 LB: > { %s32_s0 = sadd.s32 1, %s385_s15  ;;  %s233_s17 = sadd.s32 4294967295, %s389_s16   ;;  %s389_s16 = sphi %s418_s16, %s23_s16   ;;  %s385_s15 = sphi %s416_s15, %s495_s15   ;;  %s381_s14 = sphi %s414_s14, %s494_s14   ;;  %s377_s13 = sphi %s412_s13, %s493_s13  }
   0xa   : > { %p34_p0 = scmp.ge.s32.totalorder %s32_s0, 2  ;;  %p50_p1 = scmp.ne.s32.totalorder %s381_s14, %s377_s13 }
   0xb   : > { %s41_s18 = sadd.s32 1, %s381_s14  ;;  %p51_p2 = scmp.eq.s32.totalorder %s233_s17, 1 }
   0xc   : > { %s497_s0 = smov (%p34_p0, %s32_s0), 0  ;;  %p45_p3 = scmp.eq.s32.totalorder %s389_s16, 1 }
   0xd   : > { %s36_s19 = ssub.s32 %s385_s15, %s497_s0  ;;  %p442_p6 = por %p51_p2, %p50_p1 }
   0xe   : > { %p39_p4 = scmp.eq.s32.totalorder %s36_s19, 0  ;;  %p234_p5 = scmp.ne.s32.totalorder %s36_s19, 0 }
   0xf   : > { %p235_p8 = scmp.ge.s32.totalorder %s389_s16, 2 }
  0x10   : > { %s447_s21 = scalar_select %p39_p4, %s381_s14, %s41_s18  }
  0x11   : > { %p449_p7 = por %p234_p5, %p45_p3  ;;  %60 = sbr.rel (%p235_p8) target bundleno = 49 (0x31), region = 12 }
  0x12   : > { %s65_s23 = sand.u32 (!%p235_p8), 1, %s381_s14   ;;  %s68_s24 = sld [smem:[#allocation5 + %s385_s15]] (!%p235_p8) }
  0x13   : > { %s236_s25 = sshll.u32 (!%p235_p8), %s65_s23, 1 }
  0x14   : > { %s67_s26 = scalar_lea.vmem (!%p235_p8), [#allocation6], %s236_s25 }
  0x18   : > { %p69_p9 = scmp.ne.f32.partialorder %s68_s24, 0.0 }
  0x19   : > { %s237_s27 = sshll.u32 (%p69_p9), %s385_s15, 1  ;;  %s392_s3 = smov (%p69_p9), [#allocation2]  }
  0x1a   : > { %72 = sbr.rel (!%p69_p9) target bundleno = 36 (0x24), region = 16  ;;  %s78_s30 = scalar_lea.hbm (%p69_p9), %s489_s1, %s237_s27 }
  0x1b   : > { %s88_s4 = sshll.u32 (%p69_p9), %s392_s3, 4  ;;  %s86_s5 = sshll.u32 (%p69_p9), %s78_s30, 4  ;;  %s89_s4 = int_to_ptr.vmem [resolvable:$true] %s88_s4  ;;  %s87_s5 = int_to_ptr.hbm [resolvable:$true] %s86_s5 }
  0x1c   : > { %91 = dma.hbm_to_vmem [thread:$0]  (%p69_p9), %s87_s5, 32, %s89_s4, [#allocation3] }
  0x1f   : > { %369 = dma.done.wait [#allocation3], 32 }
  0x20   : > { %370 = vsyncadd [#allocation3], 4294967264  ;;  %v128_v0 = vlaneseq  ;;  %v126_v1 = vstv %s68_s24  ;;  %v125_v2 = vld [vmem:[#allocation2] sm:$0x3] }
  0x21   : > { %v127_v3 = vmul.f32 %v126_v1, %v125_v2 }
  0x22   : > { %vm130_vm0 = vcmp.lt.s32.totalorder %v128_v0, 256 }
  0x23   : > { %132 = vst.msk [vmem:[%s67_s26] sm:$0x3] %vm130_vm0, %v127_v3 }
  0x24 PF: > { %135 = sbr.rel (%p69_p9) target bundleno = 45 (0x2d), region = 36 }
  0x29   : > { %v136_v4 = vlaneseq  ;;  %v393_v5 = vmov 0.0  }
  0x2b   : > { %vm138_vm1 = vcmp.lt.s32.totalorder %v136_v4, 256 }
  0x2c   : > { %140 = vst.msk [vmem:[%s67_s26] sm:$0x3] %vm138_vm1, %v393_v5 }
  0x2d PF: > { %s240_s6 = sshll.u32 %s385_s15, 1  ;;  %s156_s10 = sshll.u32 %s67_s26, 4  ;;  %s157_s10 = int_to_ptr.vmem [resolvable:$true] %s156_s10 }
  0x2e   : > { %s154_s9 = scalar_lea.hbm %s490_s2, %s240_s6  ;;  %s142_s12 = scalar_lea.sflag [#allocation7], %s65_s23 }
  0x2f   : > { %s158_s11 = sshll.u32 %s154_s9, 4  ;;  %s159_s11 = int_to_ptr.hbm [resolvable:$true] %s158_s11 }
  0x30   : > { %245 = dma.vmem_to_hbm [thread:$0]  (%p449_p7), %s157_s10, 32, %s159_s11, %s142_s12  }
  0x31 PF: > { %p251_p10 = scmp.ge.s32.totalorder %s389_s16, 1  ;;  %s170_s17 = sand.u32 1, %s377_s13  }
  0x32   : > { %s171_s15 = scalar_lea.sflag [#allocation7], %s170_s17 }
  0x33   : > { %p248_p11 = pnand %p251_p10, %p442_p6 }
  0x35   : > { %p249_p12 = pneg %p248_p11 }
  0x37   : > { %372 = dma.done.wait (%p249_p12), %s171_s15, 32  }
  0x38   : > { %374 = vsyncadd (%p249_p12), %s171_s15, 4294967264  ;;  %s23_s16 = sadd.s32 1, %s389_s16   ;;  %s493_s13 = smov %s381_s14 }
  0x39   : > { %p20_p13 = scmp.ge.s32.totalorder %s23_s16, 3   ;;  %s494_s14 = smov %s447_s21 }
  0x3a   : > { %s495_s15 = smov %s497_s0 }
  0x3b   :  { %22 = sbr.rel (!%p20_p13) target bundleno = 9 (0x9), region = 75 }
  0x40   :  { %177 = vsyncpa [#allocation7], 1 }
  0x41   :  { %179 = vsyncpa [#allocation7 + $0x1], 1 }
  0x42   :  { %180 = vsyncmov [#allocation3] }
  0x45   :  { %s181_s18 = vpop.sfrf %180 }
  0x46   :  { %p243_p0 = scmp.ne.s32.totalorder %s181_s18, 0 }
  0x48   :  { %185 = shalt.err (%p243_p0)  }
  0x49   :  { %187 = vsyncmov [#allocation3 + $0x1] }
  0x4c   :  { %s188_s19 = vpop.sfrf %187 }
  0x4d   :  { %p244_p1 = scmp.ne.s32.totalorder %s188_s19, 0 }
  0x4f   :  { %192 = shalt.err (%p244_p1)  }

</bundles_post_ra>
